<compile_context>
chip_gen: v6e
topology: v6e:2x2x1
jax: 0.10.0
libtpu: 0.0.40
codegen_flags: <defaults>
</compile_context>

<pallas_src>
import numpy as np
import jax
import jax.numpy as jnp
from jax import lax
from jax.experimental import pallas as pl
from jax.experimental.pallas import tpu as pltpu


def _round_up(n, m):
    return ((n + m - 1) // m) * m


def _vmem_capacity_bytes():
    """Physical VMEM of the local chip; conservative (v7x, 64 MiB) fallback."""
    try:
        info = pltpu.get_tpu_info()
        cap = getattr(info, "vmem_capacity_bytes", None)
        if cap:
            return int(cap)
    except Exception:
        pass
    return 64 << 20


# ---------------------------------------------------------------------------
# Path A: table resident in VMEM, gather = one_hot(idx, V) @ table on the MXU.
# ---------------------------------------------------------------------------
def _onehot_kernel(idx_ref, table_ref, out_ref):
    # idx_ref:   (rows, 1) int32 absolute row ids (VMEM block)
    # table_ref: (Vp, D)   embedding table, resident in VMEM (same block every step)
    # out_ref:   (rows, D) output block
    rows = out_ref.shape[0]
    vocab = table_ref.shape[0]
    col = lax.broadcasted_iota(jnp.int32, (rows, vocab), 1)
    onehot = (idx_ref[...] == col).astype(table_ref.dtype)          # (rows, Vp)
    out_ref[...] = jnp.dot(
        onehot, table_ref[...],
        precision=lax.Precision.HIGHEST,          # keep the lookup ~exact on the MXU
        preferred_element_type=jnp.float32,
    ).astype(out_ref.dtype)


# ---------------------------------------------------------------------------
# Path B: table resident in VMEM (single-buffered), vectorized row gather.
# ---------------------------------------------------------------------------
def _take_kernel(idx_ref, table_ref, out_ref):
    # idx_ref: (rows,) int32; table_ref: (Vp, D) in VMEM; out_ref: (rows, D)
    out_ref[...] = jnp.take(
        table_ref[...], idx_ref[...], axis=0, mode="promise_in_bounds"
    ).astype(out_ref.dtype)


# ---------------------------------------------------------------------------
# Path C: table stays in HBM; manual per-row DMA gather.
# ---------------------------------------------------------------------------
def _hbm_gather_kernel(idx_ref, table_hbm, out_ref, sem):
    # idx_ref:   (rows,) int32 row ids in SMEM (per-block tile)
    # table_hbm: (V, D) embedding table left in HBM (pl.ANY)
    # out_ref:   (rows, D) VMEM output block
    # sem:       one DMA semaphore shared by every row copy of this block
    rows = out_ref.shape[0]

    # Issue one gather DMA per row.  Unrolled so the scalar core (descriptor
    # issue is the binding resource) can co-issue address math / descriptor
    # builds across rows.
    def issue(r, carry):
        pltpu.make_async_copy(table_hbm.at[idx_ref[r]], out_ref.at[r], sem).start()
        return carry

    lax.fori_loop(0, rows, issue, 0, unroll=8)

    # Single aggregate drain: DMA semaphores count bytes, and the `rows`
    # per-row copies above sum to exactly one (rows, D) block worth of bytes,
    # so one wait sized to the full output block consumes them all.
    pltpu.make_async_copy(out_ref, out_ref, sem).wait()
    # TODO(synk): for embed_dim < 128 the (rows, D) output block is lane-sparse;
    # a lane-dense (rows//8, 8*D) repack (static lane offset per unrolled copy)
    # would shrink the double-buffered output footprint ~8x.


# ---------------------------------------------------------------------------
# Wrappers
# ---------------------------------------------------------------------------
def _gather_vmem(abs_idx, table, rows, *, vocab_pad, use_onehot, vmem_cap):
    (np_rows,) = abs_idx.shape
    v, d = table.shape
    itemsize = jnp.dtype(table.dtype).itemsize
    if vocab_pad != v:
        table = jnp.pad(table, ((0, vocab_pad - v), (0, 0)))  # zero rows, never indexed

    out_block = rows * d * itemsize
    if use_onehot:
        kernel = _onehot_kernel
        idx = abs_idx.reshape(np_rows, 1)
        idx_spec = pl.BlockSpec((rows, 1), lambda i: (i, 0))
        # Small table: default double-buffering is fine (index_map is constant,
        # so it is only DMA'd once anyway).
        table_spec = pl.BlockSpec((vocab_pad, d), lambda i: (0, 0))
        table_buf = 2 * vocab_pad * d * itemsize
        live = 3 * rows * vocab_pad * 4            # iota + mask + one-hot temporaries
    else:
        kernel = _take_kernel
        idx = abs_idx
        idx_spec = pl.BlockSpec((rows,), lambda i: (i,))
        # Large table: single-buffer it so the VMEM budget is ~table_bytes.
        table_spec = pl.BlockSpec((vocab_pad, d), lambda i: (0, 0),
                                  pipeline_mode=pl.Buffered(1))
        table_buf = vocab_pad * d * itemsize
        live = 2 * out_block

    need = table_buf + 2 * out_block + 2 * rows * 8 + live + (4 << 20)
    vmem_limit = int(max(32 << 20, min(vmem_cap - (4 << 20), need + (8 << 20))))

    return pl.pallas_call(
        kernel,
        out_shape=jax.ShapeDtypeStruct((np_rows, d), table.dtype),
        grid=(np_rows // rows,),
        in_specs=[idx_spec, table_spec],
        out_specs=pl.BlockSpec((rows, d), lambda i: (i, 0)),
        compiler_params=pltpu.CompilerParams(
            dimension_semantics=("parallel",),
            vmem_limit_bytes=vmem_limit),
    )(idx, table)


def _gather_hbm(abs_idx, table, rows):
    (np_rows,) = abs_idx.shape
    _, d = table.shape
    return pl.pallas_call(
        _hbm_gather_kernel,
        out_shape=jax.ShapeDtypeStruct((np_rows, d), table.dtype),
        grid=(np_rows // rows,),
        in_specs=[
            # Per-block SMEM tile of row ids: bounded SMEM footprint and the
            # index transfer pipelines with the gather (vs. whole-array
            # scalar prefetch, which pins all B*F ids in SMEM).
            pl.BlockSpec((rows,), lambda i: (i,),
                         memory_space=pltpu.MemorySpace.SMEM),
            # Table stays in HBM; the kernel DMA-gathers rows out of it.
            pl.BlockSpec(memory_space=pl.ANY),
        ],
        out_specs=pl.BlockSpec((rows, d), lambda i: (i, 0)),
        scratch_shapes=[pltpu.SemaphoreType.DMA(())],
        compiler_params=pltpu.CompilerParams(
            dimension_semantics=("parallel",)),
    )(abs_idx, table)


def features_embedding(x, offsets, table, *, row_tile=1024, onehot_max_vocab=2048,
                       vmem_table_budget=None, allow_vmem_take=True):
    """x: (B, F) int, offsets: (F,) int, table: (V, D) float -> (B, F, D)."""
    B, F = x.shape
    V, D = table.shape
    N = B * F
    itemsize = jnp.dtype(table.dtype).itemsize

    # Fold the per-field offsets into the indices wrapper-side (F ints of info).
    abs_idx = (x.astype(jnp.int32) + offsets.astype(jnp.int32)[None, :]).reshape(N)

    vmem_cap = _vmem_capacity_bytes()
    if vmem_table_budget is None:
        # Generation-aware VMEM-resident-table threshold: leave headroom for the
        # double-buffered output blocks / index tiles / temporaries.
        vmem_table_budget = (80 << 20) if vmem_cap >= (128 << 20) else (24 << 20)

    vocab_pad = _round_up(V, 8)
    table_bytes = vocab_pad * D * itemsize

    if table_bytes <= vmem_table_budget and V <= onehot_max_vocab:
        path, gran = "onehot", 8
    elif table_bytes <= vmem_table_budget and allow_vmem_take:
        path, gran = "take", 128            # 1-D index blocks want lane-aligned sizes
    else:
        path, gran = "hbm", 8

    # Row tiling: blocks of up to `row_tile` rows amortize per-grid-step
    # overhead; once there is enough work, force >=2 steps so the "parallel"
    # row axis can land on both TensorCores of a v7x chip (a single extra
    # ~0.35us step on 1-TC v5e/v6e, i.e. free).
    rows = min(_round_up(row_tile, gran), max(gran, _round_up(-(-N // 2), gran)))
    Np = _round_up(N, rows)
    if Np != N:
        abs_idx = jnp.pad(abs_idx, (0, Np - N))   # padded rows gather table row 0

    if path == "hbm":
        out = _gather_hbm(abs_idx, table, rows)
    else:
        out = _gather_vmem(abs_idx, table, rows, vocab_pad=vocab_pad,
                           use_onehot=(path == "onehot"), vmem_cap=vmem_cap)

    return out[:N].reshape(B, F, D)


if __name__ == "__main__":
    key = jax.random.PRNGKey(0)
    k_tab, k_idx = jax.random.split(key)

    # Module config (small): 4 fields, embed_dim=16, batch=2.
    field_dims = [3, 4, 2, 5]
    embed_dim = 16
    batch = 2
    num_fields = len(field_dims)
    vocab = int(sum(field_dims))

    # offsets = (0, *cumsum(field_dims)[:-1]) -- same as the PyTorch module.
    offsets = jnp.asarray(
        np.concatenate(([0], np.cumsum(field_dims)[:-1])), dtype=jnp.int32)

    # Deterministic xavier_uniform_ init of the embedding table.
    limit = float(np.sqrt(6.0 / (vocab + embed_dim)))
    table = jax.random.uniform(
        k_tab, (vocab, embed_dim), dtype=jnp.float32, minval=-limit, maxval=limit)

    # Input indices: per-field valid ids, shape (batch, num_fields).
    keys = jax.random.split(k_idx, num_fields)
    cols = [jax.random.randint(keys[f], (batch,), 0, field_dims[f], dtype=jnp.int32)
            for f in range(num_fields)]
    x = jnp.stack(cols, axis=1)  # (batch, num_fields) int32

    out = features_embedding(x, offsets, table)
    out = jax.block_until_ready(out)

    # Reference (plain JAX) check of the gather semantics.  The VMEM fast path
    # goes through the MXU (one-hot matmul) with HIGHEST precision requested,
    # so allow matmul-contract rounding in the tolerance.
    ref = jnp.take(table, x + offsets[None, :], axis=0)
    assert out.shape == (batch, num_fields, embed_dim)
    assert out.dtype == jnp.float32
    np.testing.assert_allclose(np.asarray(out), np.asarray(ref), rtol=1e-3, atol=2e-3)

    print("KERNEL_OK")
</pallas_src>

<mosaic_0001>
module attributes {stable_mosaic.version = 11 : i64} {
  func.func @_onehot_kernel(%arg0: i32, %arg1: memref<8x1xi32, #tpu.memory_space<vmem>>, %arg2: memref<16x16xf32, #tpu.memory_space<vmem>>, %arg3: memref<8x16xf32, #tpu.memory_space<vmem>>) attributes {dimension_semantics = [#tpu.dimension_semantics<parallel>], iteration_bounds = array<i64: 1>, scalar_prefetch = 0 : i64, scratch_operands = 0 : i64, tpu.core_type = #tpu.core_type<tc>, window_params = [{transform_indices = @transform_0, window_bounds = array<i64: 8, 1>}, {pipeline_mode = #tpu.pipeline_mode<synchronous>, transform_indices = @transform_1, window_bounds = array<i64: 16, 16>}, {transform_indices = @transform_2, window_bounds = array<i64: 8, 16>}]} {
    %0 = tpu.iota {dimensions = array<i32: 1>} : vector<8x16xi32>
    %c0 = arith.constant 0 : index
    %c0_0 = arith.constant 0 : index
    %1 = vector.load %arg1[%c0, %c0_0] : memref<8x1xi32, #tpu.memory_space<vmem>>, vector<8x1xi32>
    %2 = vector.broadcast %1 : vector<8x1xi32> to vector<8x16xi32>
    %3 = arith.cmpi eq, %2, %0 : vector<8x16xi32>
    %4 = arith.extui %3 : vector<8x16xi1> to vector<8x16xi32>
    %5 = arith.sitofp %4 : vector<8x16xi32> to vector<8x16xf32>
    %c0_1 = arith.constant 0 : index
    %c0_2 = arith.constant 0 : index
    %6 = vector.load %arg2[%c0_1, %c0_2] : memref<16x16xf32, #tpu.memory_space<vmem>>, vector<16x16xf32>
    %cst = arith.constant dense<0.000000e+00> : vector<8x16xf32>
    %7 = tpu.matmul %5, %6, %cst {dimension_numbers = #tpu.dot_dimension_numbers<[1], [0], [0], [1], [0, 0, 1, 1], [], []>, precision = #tpu.contract_precision<fp32>} : vector<8x16xf32>, vector<16x16xf32>, vector<8x16xf32> -> vector<8x16xf32>
    %c0_3 = arith.constant 0 : index
    %c0_4 = arith.constant 0 : index
    %8 = vector.load %arg3[%c0_3, %c0_4] : memref<8x16xf32, #tpu.memory_space<vmem>>, vector<8x16xf32>
    tpu.vector_store %arg3[%c0_3, %c0_4], %7 {strides = array<i32>} : memref<8x16xf32, #tpu.memory_space<vmem>>, vector<8x16xf32>,
    return
  }
  func.func @transform_0(%arg0: i32) -> (i32, i32) {
    %c0_i32 = arith.constant 0 : i32
    %c0_i32_0 = arith.constant 0 : i32
    return %arg0, %c0_i32 : i32, i32
  }
  func.func @transform_1(%arg0: i32) -> (i32, i32) {
    %c0_i32 = arith.constant 0 : i32
    %c0_i32_0 = arith.constant 0 : i32
    %c0_i32_1 = arith.constant 0 : i32
    return %c0_i32, %c0_i32_0 : i32, i32
  }
  func.func @transform_2(%arg0: i32) -> (i32, i32) {
    %c0_i32 = arith.constant 0 : i32
    %c0_i32_0 = arith.constant 0 : i32
    return %arg0, %c0_i32 : i32, i32
  }
}

</mosaic_0001>

<bundles_post_ra>
// kernel: tpu_custom_call.1
= control target key start
LH: loop header
LB: loop body
LE: loop exit
PB: predicated region body
PF: predicated region fallthrough
CT: control target
= control target key end

     0   :  { %7 = vsyncpa [#allocation3], 0  ;;  %s674_s0 = inlined_call_operand.vmem [shape: s32[8,1], index: 0, kind: input, shape index: {}]   ;;  %s675_s1 = inlined_call_operand.hbm [shape: f32[16,16], index: 1, kind: input, shape index: {}]   ;;  %s676_s2 = inlined_call_operand.hbm [shape: f32[8,16], index: 2, kind: output, shape index: {}]  }
   0x1   :  { %8 = vsyncpa [#allocation4], 0  ;;  %s632_s9 = smov [#allocation2]  }
   0x2   :  { %s16_s10 = sshll.u32 %s632_s9, 4  ;;  %s17_s10 = int_to_ptr.vmem [resolvable:$true] %s16_s10 }
   0x3   :  { %s596_s11 = scalar_lea.vmem %s17_s10, 256  ;;  %p601_p1 = scmp.lt.s32.totalorder %s17_s10, %s17_s10 }
   0x4   :  { %p597_p0 = scmp.ne.s32.totalorder %s17_s10, %s596_s11  ;;  %p602_p2 = scmp.lt.s32.totalorder %s596_s11, %s596_s11 }
   0x6   :  { %p603_p3 = por %p602_p2, %p601_p1 }
   0x8   :  { %p604_p4 = pnand %p603_p3, %p597_p0 }
   0xa   :  { %607 = shalt.err (!%p604_p4)
}
   0xb   :  { %s633_s12 = smov 128   ;;  %s634_s13 = smov 8  }
   0xc   :  { %22 = dma.hbm_to_vmem [thread:$0]  %s675_s1, 256, %s17_s10, [#allocation3], %s633_s12, %s633_s12, %s634_s13  }
   0xd   :  { %628 = dma.done.wait [#allocation3], 256  }
   0xe   :  { %629 = vsyncadd [#allocation3], 4294967040  ;;  %v635_v0 = vmov 0   ;;  %v636_v1 = vmov 0.0   ;;  %vm637_vm0 = vmmov 0   ;;  %v28_v2 = vld [vmem:[%s674_s0] sm:$0xff]  ;;  %v26_v15 = vlaneseq }
   0xf   :  { %587 = vset.pattern.permute.xlu0 %v635_v0  ;;  %545 = vmatprep.subr.mxu1 %v636_v1  ;;  %v36_v3 = vld [vmem:[#allocation2 + $0x8] sm:$0xff]  ;;  %v35_v4 = vld [vmem:[#allocation2] sm:$0xff]  ;;  %vm37_vm1 = vcmask 130048   ;;  %s638_s0 = smov [#allocation5]  }
  0x10   :  { %538 = vmatprep.subr.mxu0 %v636_v1  ;;  %549 = vmatprep.mubr.msk.f32.mxu1 %vm637_vm0, %v636_v1  ;;  %v70_v5 = vand.u32 4294901760, %v36_v3  ;;  %v73_v6 = vand.u32 4294901760, %v35_v4  ;;  %v27_v16 = vand.u32 127, %v26_v15  ;;  %s507_s1 = sshll.u32 %s638_s0, 4  ;;  %s508_s1 = int_to_ptr.vmem [resolvable:$true] %s507_s1 }
  0x11   :  { %542 = vmatprep.mubr.msk.f32.mxu0 %vm637_vm0, %v636_v1  ;;  %30 = vperm.xlu0 %587, %v28_v2   ;;  %s608_s18 = scalar_lea.vmem %s508_s1, 128  ;;  %p613_p6 = scmp.lt.s32.totalorder %s508_s1, %s508_s1 }
  0x12   :  { %v148_v7 = vsub.f32 %v36_v3, %v70_v5  ;;  %v155_v8 = vsub.f32 %v35_v4, %v73_v6  ;;  %539 = vmatpush3.msra.mxu0 %v70_v5  ;;  %p609_p5 = scmp.ne.s32.totalorder %s508_s1, %s608_s18  ;;  %p614_p7 = scmp.lt.s32.totalorder %s608_s18, %s608_s18 }
  0x13   :  { %540 = vmatprep.subr.mxu0 %v636_v1 }
  0x14   :  { %v149_v9 = vand.u32 4294901760, %v148_v7  ;;  %v156_v10 = vand.u32 4294901760, %v155_v8  ;;  %541 = vmatpush3.msra.mxu0 %v73_v6  ;;  %p615_p8 = por %p614_p7, %p613_p6 }
  0x15   :  { %552 = vmatprep.subr.mxu0 %v636_v1 }
  0x16   :  { %v150_v11 = vsub.f32 %v148_v7, %v149_v9  ;;  %v157_v12 = vsub.f32 %v155_v8, %v156_v10  ;;  %p616_p9 = pnand %p615_p8, %p609_p5 }
  0x18   :  { %v151_v13 = vand.u32 4294901760, %v150_v11  ;;  %v158_v14 = vand.u32 4294901760, %v157_v12 }
  0x1a   :  { %546 = vmatpush3.msra.mxu1 %v151_v13 }
  0x1b   :  { %547 = vmatprep.subr.mxu1 %v636_v1 }
  0x1c   :  { %548 = vmatpush3.msra.mxu1 %v158_v14 }
  0x1d   :  { %559 = vmatprep.subr.mxu1 %v636_v1 }
  0x8c   :  { %v31_v17 = vpop.permute.xlu0 %30 }
  0x8d   :  { %vm32_vm2 = vcmp.eq.s32.totalorder %v31_v17, %v27_v16 }
  0x8e   :  { %v516_v18 = vsel %vm32_vm2, 1.0, %v636_v1 }
  0x8f   :  { %v39_v19 = vsel %vm37_vm1, %v516_v18, 0  ;;  %550 = vmatmul.mubr.msk.f32.vlgmr.msra.gmra.mxu1 %vm37_vm1, %v516_v18 }
  0x90   :  { %v109_v20 = vsub.f32 %v39_v19, %v39_v19  ;;  %560 = vmatpush3.msra.mxu1 %v70_v5  ;;  %563 = vmatprep.mubr.msk.f32.mxu1 %vm637_vm0, %v636_v1 }
  0x91   :  { %561 = vmatprep.subr.mxu1 %v636_v1 }
  0x92   :  { %562 = vmatpush3.msra.mxu1 %v73_v6  ;;  %v110_v21 = vand.u32 4294901760, %v109_v20 }
  0x93   :  { %573 = vmatprep.subr.mxu1 %v636_v1 }
  0x94   :  { %564 = vmatmul.mubr.f32.vlgmr.msra.gmra.mxu1 %v110_v21  ;;  %v111_v22 = vsub.f32 %v109_v20, %v110_v21 }
  0x95   :  { %574 = vmatpush3.msra.mxu1 %v70_v5  ;;  %577 = vmatprep.mubr.msk.f32.mxu1 %vm637_vm0, %v636_v1 }
  0x96   :  { %575 = vmatprep.subr.mxu1 %v636_v1  ;;  %v112_v23 = vand.u32 4294901760, %v111_v22 }
  0x97   :  { %576 = vmatpush3.msra.mxu1 %v73_v6 }
  0x98   :  { %543 = vmatmul.mubr.f32.vlgmr.msra.gmra.mxu0 %v112_v23  ;;  %578 = vmatmul.mubr.msk.f32.vlgmr.msra.gmra.mxu1 %vm37_vm1, %v516_v18 }
  0x99   :  { %553 = vmatpush3.msra.mxu0 %v148_v7  ;;  %556 = vmatprep.mubr.msk.f32.mxu0 %vm637_vm0, %v636_v1 }
  0x9a   :  { %554 = vmatprep.subr.mxu0 %v636_v1 }
  0x9b   :  { %555 = vmatpush3.msra.mxu0 %v155_v8 }
  0x9c   :  { %566 = vmatprep.subr.mxu0 %v636_v1  ;;  %557 = vmatmul.mubr.f32.vlgmr.msra.gmra.mxu0 %v109_v20 }
  0x9d   :  { %567 = vmatpush3.msra.mxu0 %v149_v9  ;;  %570 = vmatprep.mubr.msk.f32.mxu0 %vm637_vm0, %v636_v1 }
  0x9e   :  { %568 = vmatprep.subr.mxu0 %v636_v1 }
  0x9f   :  { %569 = vmatpush3.msra.mxu0 %v156_v10 }
  0xa0   :  { %571 = vmatmul.mubr.msk.f32.vlgmr.msra.gmra.mxu0 %vm37_vm1, %v516_v18 }
 0x14f   :  { %v195_v24 = vpop.f32.mrf.mxu1 }
 0x151   :  { %v551_v25 = vpop.f32.mrf.mxu1 }
 0x154   :  { %v346_v26 = vpop.f32.mrf.mxu1 }
 0x156   :  { %v565_v27 = vpop.f32.mrf.mxu1 }
 0x158   :  { %v114_v28 = vpop.f32.mrf.mxu0  ;;  %v496_v29 = vpop.f32.mrf.mxu1 }
 0x159   :  { %v196_v32 = vadd.f32 %v195_v24, %v114_v28 }
 0x15a   :  { %v544_v30 = vpop.f32.mrf.mxu0  ;;  %v579_v31 = vpop.f32.mrf.mxu1 }
 0x15c   :  { %v271_v33 = vpop.f32.mrf.mxu0 }
 0x15d   :  { %v272_v34 = vadd.f32 %v271_v33, %v196_v32 }
 0x15e   :  { %v558_v35 = vpop.f32.mrf.mxu0 }
 0x15f   :  { %v347_v36 = vadd.f32 %v346_v26, %v272_v34 }
 0x160   :  { %v423_v37 = vpop.f32.mrf.mxu0 }
 0x161   :  { %v424_v38 = vadd.f32 %v423_v37, %v347_v36 }
 0x162   :  { %v572_v39 = vpop.f32.mrf.mxu0 }
 0x163   :  { %v497_v40 = vadd.f32 %v496_v29, %v424_v38 }
 0x165   :  { %500 = vst.msk [vmem:[#allocation5] sm:$0xff] %vm37_vm1, %v497_v40 }
 0x166   :  { %619 = shalt.err (!%p616_p9)
}
 0x167   :  { %510 = dma.vmem_to_hbm [thread:$0]  %s508_s1, 128, %s676_s2, [#allocation4]  }
 0x168   :  { %630 = dma.done.wait [#allocation4], 128  }
 0x169   :  { %631 = vsyncadd [#allocation4], 4294967168 }
 0x16a   :  { %514 = vsyncpa [#allocation3], 1 }
 0x16b   :  { %515 = vsyncpa [#allocation4], 1 }

</bundles_post_ra>
